<compile_context>
chip_gen: v7x
topology: tpu7x:2x2x1
jax: 0.10.0
libtpu: 0.0.40
codegen_flags: <defaults>
</compile_context>

<pallas_src>
import jax
import jax.numpy as jnp
from jax import lax
from jax.experimental import pallas as pl
from jax.experimental.pallas import tpu as pltpu

_BN_EPS = 1e-5                         # PyTorch BatchNorm1d default
_VMEM_BUDGET_BYTES = 40 * 1024 * 1024  # tile-sizing budget; fits v7x's 64 MiB VMEM with headroom


# ---------------------------------------------------------------------------
# Fused kernel: one output-feature tile of ReLU(BatchNorm1d(x @ W))
# ---------------------------------------------------------------------------
def _mlp_block_kernel(x_ref, w_ref, gb_ref, o_ref):
    # x_ref:  (N, D_in)   full batch (same block every grid step)
    # w_ref:  (D_in, TN)  feature tile of the weight (torch weight transposed)
    # gb_ref: (8, TN)     row 0 = gamma, row 1 = beta, rows 2..7 padding
    # o_ref:  (N, TN)
    y = jnp.dot(x_ref[...], w_ref[...], preferred_element_type=jnp.float32)

    # Training-mode batch statistics in ONE reduction sweep over the slab.
    # var = E[y^2] - mean^2, kept in f32 and clamped against tiny negative
    # cancellation error.  (Linear bias is omitted upstream: a per-feature
    # constant is exactly cancelled by the mean subtraction.)
    inv_n = jnp.float32(1.0 / y.shape[0])
    mean = jnp.sum(y, axis=0, keepdims=True) * inv_n
    mean_sq = jnp.sum(y * y, axis=0, keepdims=True) * inv_n
    var = jnp.maximum(mean_sq - mean * mean, 0.0)

    gamma = gb_ref[0:1, :]
    beta = gb_ref[1:2, :]
    scale = lax.rsqrt(var + _BN_EPS) * gamma          # EUP rsqrt, no VALU divide
    shift = beta - mean * scale

    # Single normalize + ReLU pass over the slab.
    o_ref[...] = jnp.maximum(y * scale + shift, 0.0).astype(o_ref.dtype)


# ---------------------------------------------------------------------------
# Tiling / pallas_call construction
# ---------------------------------------------------------------------------
def _pick_feature_tile(n, d_in, d_out_p, itemsize=4):
    """Largest lane-dense feature tile (multiple of 128, <=1024) dividing the
    padded D_out that fits the VMEM budget, keeping >=2 grid steps whenever
    D_out allows it (so v7x can shard the parallel axis across both TCs)."""
    best = 128
    tn = 128
    while tn <= min(d_out_p, 1024):
        if d_out_p % tn == 0 and not (d_out_p >= 256 and d_out_p // tn < 2):
            vmem = itemsize * (
                n * d_in            # x, single-buffered
                + 2 * d_in * tn     # W, double-buffered
                + 2 * 8 * tn        # packed gamma/beta, double-buffered
                + 2 * n * tn        # output tile, double-buffered
                + 2 * n * tn        # headroom for the f32 epilogue slab
            )
            if vmem <= _VMEM_BUDGET_BYTES:
                best = tn
        tn += 128
    return best


def _build_call(n, d_in, d_out_p, tn, out_dtype, vmem_limit_bytes,
                single_buffer_x):
    x_spec_kwargs = (
        dict(pipeline_mode=pl.Buffered(1)) if single_buffer_x else {})
    flops = 2 * n * d_in * d_out_p + 8 * n * d_out_p
    bytes_accessed = 4 * (n * d_in + d_in * d_out_p + 8 * d_out_p
                          + n * d_out_p)
    return pl.pallas_call(
        _mlp_block_kernel,
        out_shape=jax.ShapeDtypeStruct((n, d_out_p), out_dtype),
        grid=(d_out_p // tn,),
        in_specs=[
            # x: identical block every step -> single buffer saves VMEM.
            pl.BlockSpec((n, d_in), lambda j: (0, 0), **x_spec_kwargs),
            pl.BlockSpec((d_in, tn), lambda j: (0, j)),   # W feature tile
            pl.BlockSpec((8, tn), lambda j: (0, j)),      # packed gamma/beta
        ],
        out_specs=pl.BlockSpec((n, tn), lambda j: (0, j)),
        compiler_params=pltpu.CompilerParams(
            dimension_semantics=("parallel",),
            vmem_limit_bytes=vmem_limit_bytes),
        cost_estimate=pl.CostEstimate(
            flops=flops, transcendentals=d_out_p,
            bytes_accessed=bytes_accessed),
    )


# ---------------------------------------------------------------------------
# Wrapper
# ---------------------------------------------------------------------------
def mlp_block_forward(params, x, dropout=0.0):
    """x: (N, D_in) -> (N, D_out). Matches MLPBlock.forward in training mode."""
    if dropout != 0.0:
        # TODO(synk): in-kernel stochastic dropout for p > 0 via
        # pltpu.prng_seed / pltpu.prng_random_bits + 1/(1-p) scaling.
        raise NotImplementedError("dropout > 0 not implemented")

    n, d_in = x.shape
    w = params["w"]                                    # (D_in, D_out) == torch weight.T
    d_out = w.shape[1]
    gamma = params["gamma"].astype(jnp.float32)
    beta = params["beta"].astype(jnp.float32)
    # NOTE: params["b"] (the Linear bias) is intentionally NOT passed to the
    # kernel: BatchNorm's mean subtraction cancels any per-feature constant.

    # Pad D_out up to a multiple of 128 -> lane-dense, unmasked stores.
    d_out_p = ((d_out + 127) // 128) * 128
    if d_out_p != d_out:
        pad = d_out_p - d_out
        w = jnp.pad(w, ((0, 0), (0, pad)))
        gamma = jnp.pad(gamma, (0, pad))
        beta = jnp.pad(beta, (0, pad))

    # gamma/beta packed into one (8, D_out_p) slab -> one parameter DMA/step.
    gb = jnp.zeros((8, d_out_p), jnp.float32)
    gb = gb.at[0].set(gamma).at[1].set(beta)

    tn = _pick_feature_tile(n, d_in, d_out_p)
    vmem_est = 4 * (n * d_in + 2 * d_in * tn + 2 * 8 * tn + 4 * n * tn)
    vmem_limit = int(min(max(2 * vmem_est, 32 * 1024 * 1024),
                         64 * 1024 * 1024))
    # TODO(synk): large-batch fallback (batch-tiled grid with VMEM sum/sumsq
    # scratch + second normalize pass) when the full batch doesn't fit VMEM.
    # TODO(synk): optional bf16 MXU operands on v6e/v7x (BN math kept in f32).

    try:
        out = _build_call(n, d_in, d_out_p, tn, x.dtype, vmem_limit,
                          single_buffer_x=True)(x, w, gb)
    except Exception:
        # Fallback for JAX builds without per-BlockSpec pipeline_mode support.
        out = _build_call(n, d_in, d_out_p, tn, x.dtype, vmem_limit,
                          single_buffer_x=False)(x, w, gb)

    return out[:, :d_out] if d_out_p != d_out else out


# ---------------------------------------------------------------------------
# Pure-JAX reference (training-mode BatchNorm1d, ReLU, dropout p=0)
# ---------------------------------------------------------------------------
def mlp_block_reference(params, x):
    y = x @ params["w"] + params["b"]
    mean = jnp.mean(y, axis=0, keepdims=True)
    var = jnp.mean(jnp.square(y - mean), axis=0, keepdims=True)
    y_hat = (y - mean) / jnp.sqrt(var + _BN_EPS)
    return jnp.maximum(y_hat * params["gamma"] + params["beta"], 0.0)


if __name__ == "__main__":
    # Small MLP-block shapes: batch=32, in=64, out=500.
    # D_out=500 exercises the pad-to-128 path (padded to 512 -> tn=256, two
    # "parallel" grid steps so v7x can use both TensorCores).
    N, D_in, D_out = 32, 64, 500

    ks = jax.random.split(jax.random.PRNGKey(0), 5)
    params = {
        "w": 0.1 * jax.random.normal(ks[0], (D_in, D_out), jnp.float32),
        "b": 0.1 * jax.random.normal(ks[1], (D_out,), jnp.float32),
        "gamma": 1.0 + 0.1 * jax.random.normal(ks[2], (D_out,), jnp.float32),
        "beta": 0.1 * jax.random.normal(ks[3], (D_out,), jnp.float32),
    }
    x = jax.random.normal(ks[4], (N, D_in), jnp.float32)

    out = jax.block_until_ready(mlp_block_forward(params, x))
    ref = mlp_block_reference(params, x)

    assert out.shape == (N, D_out), out.shape
    max_err = float(jnp.max(jnp.abs(out - ref)))
    assert jnp.allclose(out, ref, atol=2e-4, rtol=2e-4), max_err

    print("KERNEL_OK")
</pallas_src>

<mosaic_0001>
module attributes {stable_mosaic.version = 11 : i64} {
  func.func @_mlp_block_kernel(%arg0: i32, %arg1: memref<32x64xf32, #tpu.memory_space<vmem>>, %arg2: memref<64x256xf32, #tpu.memory_space<vmem>>, %arg3: memref<8x256xf32, #tpu.memory_space<vmem>>, %arg4: memref<32x256xf32, #tpu.memory_space<vmem>>) attributes {dimension_semantics = [#tpu.dimension_semantics<parallel>], iteration_bounds = array<i64: 2>, scalar_prefetch = 0 : i64, scratch_operands = 0 : i64, tpu.core_type = #tpu.core_type<tc>, window_params = [{pipeline_mode = #tpu.pipeline_mode<synchronous>, transform_indices = @transform_0, window_bounds = array<i64: 32, 64>}, {transform_indices = @transform_1, window_bounds = array<i64: 64, 256>}, {transform_indices = @transform_2, window_bounds = array<i64: 8, 256>}, {transform_indices = @transform_3, window_bounds = array<i64: 32, 256>}]} {
    %c0 = arith.constant 0 : index
    %c0_0 = arith.constant 0 : index
    %0 = vector.load %arg1[%c0, %c0_0] : memref<32x64xf32, #tpu.memory_space<vmem>>, vector<32x64xf32>
    %c0_1 = arith.constant 0 : index
    %c0_2 = arith.constant 0 : index
    %1 = vector.load %arg2[%c0_1, %c0_2] : memref<64x256xf32, #tpu.memory_space<vmem>>, vector<64x256xf32>
    %cst = arith.constant dense<0.000000e+00> : vector<32x256xf32>
    %2 = tpu.matmul %0, %1, %cst {dimension_numbers = #tpu.dot_dimension_numbers<[1], [0], [0], [1], [0, 0, 1, 1], [], []>} : vector<32x64xf32>, vector<64x256xf32>, vector<32x256xf32> -> vector<32x256xf32>
    %cst_3 = arith.constant dense<0.000000e+00> : vector<256xf32>
    %3 = vector.multi_reduction <add>, %2, %cst_3 [0] : vector<32x256xf32> to vector<256xf32>
    %4 = vector.shape_cast %3 : vector<256xf32> to vector<1x256xf32>
    %cst_4 = arith.constant 3.125000e-02 : f32
    %5 = vector.broadcast %cst_4 : f32 to vector<1x256xf32>
    %6 = arith.mulf %4, %5 : vector<1x256xf32>
    %7 = arith.mulf %2, %2 : vector<32x256xf32>
    %cst_5 = arith.constant dense<0.000000e+00> : vector<256xf32>
    %8 = vector.multi_reduction <add>, %7, %cst_5 [0] : vector<32x256xf32> to vector<256xf32>
    %9 = vector.shape_cast %8 : vector<256xf32> to vector<1x256xf32>
    %cst_6 = arith.constant 3.125000e-02 : f32
    %10 = vector.broadcast %cst_6 : f32 to vector<1x256xf32>
    %11 = arith.mulf %9, %10 : vector<1x256xf32>
    %12 = arith.mulf %6, %6 : vector<1x256xf32>
    %13 = arith.subf %11, %12 : vector<1x256xf32>
    %cst_7 = arith.constant 0.000000e+00 : f32
    %14 = vector.broadcast %cst_7 : f32 to vector<1x256xf32>
    %15 = arith.maximumf %13, %14 : vector<1x256xf32>
    %c0_8 = arith.constant 0 : index
    %c0_9 = arith.constant 0 : index
    %16 = vector.load %arg3[%c0_8, %c0_9] : memref<8x256xf32, #tpu.memory_space<vmem>>, vector<1x256xf32>
    %c1 = arith.constant 1 : index
    %c0_10 = arith.constant 0 : index
    %17 = vector.load %arg3[%c1, %c0_10] : memref<8x256xf32, #tpu.memory_space<vmem>>, vector<1x256xf32>
    %cst_11 = arith.constant 9.99999974E-6 : f32
    %18 = vector.broadcast %cst_11 : f32 to vector<1x256xf32>
    %19 = arith.addf %15, %18 : vector<1x256xf32>
    %20 = math.rsqrt %19 : vector<1x256xf32>
    %21 = arith.mulf %20, %16 : vector<1x256xf32>
    %22 = arith.mulf %6, %21 : vector<1x256xf32>
    %23 = arith.subf %17, %22 : vector<1x256xf32>
    %24 = vector.broadcast %21 : vector<1x256xf32> to vector<32x256xf32>
    %25 = arith.mulf %2, %24 : vector<32x256xf32>
    %26 = vector.broadcast %23 : vector<1x256xf32> to vector<32x256xf32>
    %27 = arith.addf %25, %26 : vector<32x256xf32>
    %cst_12 = arith.constant 0.000000e+00 : f32
    %28 = vector.broadcast %cst_12 : f32 to vector<32x256xf32>
    %29 = arith.maximumf %27, %28 : vector<32x256xf32>
    %c0_13 = arith.constant 0 : index
    %c0_14 = arith.constant 0 : index
    %30 = vector.load %arg4[%c0_13, %c0_14] : memref<32x256xf32, #tpu.memory_space<vmem>>, vector<32x256xf32>
    tpu.vector_store %arg4[%c0_13, %c0_14], %29 {strides = array<i32>} : memref<32x256xf32, #tpu.memory_space<vmem>>, vector<32x256xf32>,
    return
  }
  func.func @transform_0(%arg0: i32) -> (i32, i32) {
    %c0_i32 = arith.constant 0 : i32
    %c0_i32_0 = arith.constant 0 : i32
    %c0_i32_1 = arith.constant 0 : i32
    return %c0_i32, %c0_i32_0 : i32, i32
  }
  func.func @transform_1(%arg0: i32) -> (i32, i32) {
    %c0_i32 = arith.constant 0 : i32
    %c0_i32_0 = arith.constant 0 : i32
    return %c0_i32, %arg0 : i32, i32
  }
  func.func @transform_2(%arg0: i32) -> (i32, i32) {
    %c0_i32 = arith.constant 0 : i32
    %c0_i32_0 = arith.constant 0 : i32
    return %c0_i32, %arg0 : i32, i32
  }
  func.func @transform_3(%arg0: i32) -> (i32, i32) {
    %c0_i32 = arith.constant 0 : i32
    %c0_i32_0 = arith.constant 0 : i32
    return %c0_i32, %arg0 : i32, i32
  }
}

module attributes {stable_mosaic.version = 11 : i64} {
  func.func @_mlp_block_kernel(%arg0: i32, %arg1: memref<32x64xf32, #tpu.memory_space<vmem>>, %arg2: memref<64x256xf32, #tpu.memory_space<vmem>>, %arg3: memref<8x256xf32, #tpu.memory_space<vmem>>, %arg4: memref<32x256xf32, #tpu.memory_space<vmem>>) attributes {dimension_semantics = [#tpu.dimension_semantics<parallel>], iteration_bounds = array<i64: 2>, scalar_prefetch = 0 : i64, scratch_operands = 0 : i64, tpu.core_type = #tpu.core_type<tc>, window_params = [{pipeline_mode = #tpu.pipeline_mode<synchronous>, transform_indices = @transform_0, window_bounds = array<i64: 32, 64>}, {transform_indices = @transform_1, window_bounds = array<i64: 64, 256>}, {transform_indices = @transform_2, window_bounds = array<i64: 8, 256>}, {transform_indices = @transform_3, window_bounds = array<i64: 32, 256>}]} {
    %c0 = arith.constant 0 : index
    %c0_0 = arith.constant 0 : index
    %0 = vector.load %arg1[%c0, %c0_0] : memref<32x64xf32, #tpu.memory_space<vmem>>, vector<32x64xf32>
    %c0_1 = arith.constant 0 : index
    %c0_2 = arith.constant 0 : index
    %1 = vector.load %arg2[%c0_1, %c0_2] : memref<64x256xf32, #tpu.memory_space<vmem>>, vector<64x256xf32>
    %cst = arith.constant dense<0.000000e+00> : vector<32x256xf32>
    %2 = tpu.matmul %0, %1, %cst {dimension_numbers = #tpu.dot_dimension_numbers<[1], [0], [0], [1], [0, 0, 1, 1], [], []>} : vector<32x64xf32>, vector<64x256xf32>, vector<32x256xf32> -> vector<32x256xf32>
    %cst_3 = arith.constant dense<0.000000e+00> : vector<256xf32>
    %3 = vector.multi_reduction <add>, %2, %cst_3 [0] : vector<32x256xf32> to vector<256xf32>
    %4 = vector.shape_cast %3 : vector<256xf32> to vector<1x256xf32>
    %cst_4 = arith.constant 3.125000e-02 : f32
    %5 = vector.broadcast %cst_4 : f32 to vector<1x256xf32>
    %6 = arith.mulf %4, %5 : vector<1x256xf32>
    %7 = arith.mulf %2, %2 : vector<32x256xf32>
    %cst_5 = arith.constant dense<0.000000e+00> : vector<256xf32>
    %8 = vector.multi_reduction <add>, %7, %cst_5 [0] : vector<32x256xf32> to vector<256xf32>
    %9 = vector.shape_cast %8 : vector<256xf32> to vector<1x256xf32>
    %cst_6 = arith.constant 3.125000e-02 : f32
    %10 = vector.broadcast %cst_6 : f32 to vector<1x256xf32>
    %11 = arith.mulf %9, %10 : vector<1x256xf32>
    %12 = arith.mulf %6, %6 : vector<1x256xf32>
    %13 = arith.subf %11, %12 : vector<1x256xf32>
    %cst_7 = arith.constant 0.000000e+00 : f32
    %14 = vector.broadcast %cst_7 : f32 to vector<1x256xf32>
    %15 = arith.maximumf %13, %14 : vector<1x256xf32>
    %c0_8 = arith.constant 0 : index
    %c0_9 = arith.constant 0 : index
    %16 = vector.load %arg3[%c0_8, %c0_9] : memref<8x256xf32, #tpu.memory_space<vmem>>, vector<1x256xf32>
    %c1 = arith.constant 1 : index
    %c0_10 = arith.constant 0 : index
    %17 = vector.load %arg3[%c1, %c0_10] : memref<8x256xf32, #tpu.memory_space<vmem>>, vector<1x256xf32>
    %cst_11 = arith.constant 9.99999974E-6 : f32
    %18 = vector.broadcast %cst_11 : f32 to vector<1x256xf32>
    %19 = arith.addf %15, %18 : vector<1x256xf32>
    %20 = math.rsqrt %19 : vector<1x256xf32>
    %21 = arith.mulf %20, %16 : vector<1x256xf32>
    %22 = arith.mulf %6, %21 : vector<1x256xf32>
    %23 = arith.subf %17, %22 : vector<1x256xf32>
    %24 = vector.broadcast %21 : vector<1x256xf32> to vector<32x256xf32>
    %25 = arith.mulf %2, %24 : vector<32x256xf32>
    %26 = vector.broadcast %23 : vector<1x256xf32> to vector<32x256xf32>
    %27 = arith.addf %25, %26 : vector<32x256xf32>
    %cst_12 = arith.constant 0.000000e+00 : f32
    %28 = vector.broadcast %cst_12 : f32 to vector<32x256xf32>
    %29 = arith.maximumf %27, %28 : vector<32x256xf32>
    %c0_13 = arith.constant 0 : index
    %c0_14 = arith.constant 0 : index
    %30 = vector.load %arg4[%c0_13, %c0_14] : memref<32x256xf32, #tpu.memory_space<vmem>>, vector<32x256xf32>
    tpu.vector_store %arg4[%c0_13, %c0_14], %29 {strides = array<i32>} : memref<32x256xf32, #tpu.memory_space<vmem>>, vector<32x256xf32>,
    return
  }
  func.func @transform_0(%arg0: i32) -> (i32, i32) {
    %c0_i32 = arith.constant 0 : i32
    %c0_i32_0 = arith.constant 0 : i32
    %c0_i32_1 = arith.constant 0 : i32
    return %c0_i32, %c0_i32_0 : i32, i32
  }
  func.func @transform_1(%arg0: i32) -> (i32, i32) {
    %c0_i32 = arith.constant 0 : i32
    %c0_i32_0 = arith.constant 0 : i32
    return %c0_i32, %arg0 : i32, i32
  }
  func.func @transform_2(%arg0: i32) -> (i32, i32) {
    %c0_i32 = arith.constant 0 : i32
    %c0_i32_0 = arith.constant 0 : i32
    return %c0_i32, %arg0 : i32, i32
  }
  func.func @transform_3(%arg0: i32) -> (i32, i32) {
    %c0_i32 = arith.constant 0 : i32
    %c0_i32_0 = arith.constant 0 : i32
    return %c0_i32, %arg0 : i32, i32
  }
}

</mosaic_0001>

<bundles_post_ra>
// kernel: tpu_custom_call.1
= control target key start
LH: loop header
LB: loop body
LE: loop exit
PB: predicated region body
PF: predicated region fallthrough
CT: control target
= control target key end

     0   :  { %8 = vsyncpa [#allocation3], 0  ;;  %s1264_s0 = inlined_call_operand.hbm [shape: f32[32,64], index: 0, kind: input, shape index: {}]   ;;  %s1265_s1 = inlined_call_operand.hbm [shape: f32[64,512], index: 1, kind: input, shape index: {}]   ;;  %s1266_s2 = inlined_call_operand.hbm [shape: f32[8,512], index: 2, kind: input, shape index: {}]   ;;  %s1267_s3 = inlined_call_operand.hbm [shape: f32[32,512], index: 3, kind: output, shape index: {}]  }
   0x1   :  { %9 = vsyncpa [#allocation6], 0 }
   0x2   :  { %11 = vsyncpa [#allocation6 + $0x1], 0 }
   0x3   :  { %12 = vsyncpa [#allocation4], 0 }
   0x4   :  { %14 = vsyncpa [#allocation4 + $0x1], 0  ;;  %s951_s12 = smov 0   ;;  %s953_s13 = smov 0  }
   0x5   :  { %s955_s14 = smov 0   ;;  %s957_s15 = smov 0  }
   0x6 LB: > { %s972_s16 = sadd.s32 1, %s915_s15   ;;  %s48_s17 = sadd.s32 1, %s911_s14  ;;  %s915_s15 = sphi %s957_s15, %s1294_s15   ;;  %s911_s14 = sphi %s955_s14, %s1293_s14   ;;  %s907_s13 = sphi %s953_s13, %s1292_s13   ;;  %s903_s12 = sphi %s951_s12, %s1291_s12  }
   0x7   : > { %s45_s18 = ssub.s32 %s915_s15, %s972_s16  ;;  %p55_p0 = scmp.ne.s32.totalorder %s911_s14, %s907_s13 }
   0x8   : > { %p46_p1 = scmp.eq.s32.totalorder %s45_s18, 0  ;;  %p56_p2 = scmp.eq.s32.totalorder %s915_s15, 0 }
   0x9   : > { %p707_p4 = scmp.lt.s32.totalorder %s915_s15, 2  ;;  %s150_s20 = sand.u32 1, %s915_s15  }
   0xa   : > { %s983_s19 = scalar_select %p46_p1, %s911_s14, %s48_s17  }
   0xb   : > { %p57_p5 = por %p56_p2, %p55_p0  ;;  %s152_s21 = sand.u32 1, %s911_s14  }
   0xc   : > { %s633_s22 = sshll.u32 %s152_s21, 7  ;;  %s654_s23 = sshll.u32 %s915_s15, 8 }
   0xd   : > { %s998_s26 = scalar_lea.hbm %s1265_s1, %s654_s23  ;;  %s154_s27 = scalar_lea.vmem [#allocation5], %s633_s22 }
   0xe   : > { %s161_s28 = sshll.u32 %s154_s27, 4  ;;  %p1000_p6 = pnand %p707_p4, %p57_p5  ;;  %s1004_s28 = int_to_ptr.vmem [resolvable:$true] %s161_s28 }
   0xf   : > { %s1006_s30 = scalar_lea.sflag [#allocation6], %s150_s20  ;;  %s757_s4 = scalar_lea.hbm %s998_s26, 2048 }
  0x10   : > { %s1275_s29 = scalar_select %p1000_p6, 1, 0 }
  0x11   : > { %p758_p7 = scmp.ne.s32.totalorder %s998_s26, %s757_s4  ;;  %p1269_p8 = pneg %p1000_p6 }
  0x12   : > { %s762_s7 = scalar_lea.hbm %s1265_s1, 4096  ;;  %p763_p11 = scmp.lt.u32.totalorder %s998_s26, %s1265_s1 }
  0x13   : > { %p760_p9 = pnand %p1269_p8, %p758_p7  ;;  %p764_p12 = scmp.lt.u32.totalorder %s762_s7, %s757_s4 }
  0x14   : > { %p766_p1 = scmp.lt.u32.totalorder %s757_s4, %s998_s26 }
  0x15   : > { %p761_p10 = pneg %p760_p9  ;;  %p765_p13 = por %p764_p12, %p763_p11 }
  0x17   : > { %p767_p2 = por %p766_p1, %p765_p13 }
  0x19   : > { %p768_p4 = pnand %p767_p2, %p761_p10 }
  0x1b   : > { %771 = shalt.err (!%p768_p4)
}
  0x1c   : > { %s772_s10 = scalar_lea.vmem %s1004_s28, 2048  ;;  %s917_s11 = smov [#allocation5]  }
  0x1d   : > { %p773_p5 = scmp.ne.s32.totalorder %s1004_s28, %s772_s10  ;;  %s777_s17 = sshll.u32 %s917_s11, 4  ;;  %s778_s17 = int_to_ptr.vmem [resolvable:$false] %s777_s17 }
  0x1e   : > { %s779_s18 = scalar_lea.vmem %s778_s17, 4096  ;;  %p780_p3 = scmp.lt.s32.totalorder %s1004_s28, %s778_s17 }
  0x1f   : > { %p775_p7 = pnand %p773_p5, %p1269_p8  ;;  %p781_p11 = scmp.lt.s32.totalorder %s779_s18, %s772_s10 }
  0x21   : > { %p776_p9 = pneg %p775_p7  ;;  %p782_p12 = por %p781_p11, %p780_p3 }
  0x23   : > { %p783_p13 = pnand %p782_p12, %p776_p9 }
  0x25   : > { %786 = shalt.err (!%p783_p13)
}
  0x26   : > { %s918_s20 = smov 512   ;;  %s919_s22 = smov 256  }
  0x27   : > { %s920_s24 = smov 16   ;;  %s1035_s25 = sadd.s32 4294967295, %s915_s15  }
  0x28   : > { %698 = dma.hbm_to_vmem [thread:$0]  (!%p1000_p6), %s998_s26, 2048, %s1004_s28, %s1006_s30, %s918_s20, %s919_s22, %s920_s24  }
  0x29   : > { %s629_s27 = sadd.s32 4294967294, %s915_s15   ;;  %p61_p3 = scmp.ne.s32.totalorder %s907_s13, %s903_s12 }
  0x2a   : > { %p1268_p10 = scmp.eq.s32.totalorder %s1035_s25, 0  ;;  %p111_p1 = scmp.eq.s32.totalorder %s1035_s25, 1 }
  0x2b   : > { %p117_p2 = scmp.eq.s32.totalorder %s629_s27, 1  ;;  %p630_p4 = scmp.ge.s32.totalorder %s915_s15, 1 }
  0x2c   : > { %p1045_p5 = por %p1268_p10, %p61_p3  ;;  %p1052_p7 = por %p111_p1, %p55_p0 }
  0x2d   : > { %p1056_p9 = por %p117_p2, %p61_p3  ;;  %p124_p11 = scmp.lt.s32.totalorder %s915_s15, 3 }
  0x2e   : > { %s1276_s4 = scalar_select %p1045_p5, 1, 0 }
  0x2f   : > { %s1277_s26 = scalar_select %p1052_p7, 1, 0 }
  0x30   : > { %s1278_s28 = scalar_select %p1056_p9, 1, 0 }
  0x31   : > { %p1061_p12 = pnand %p630_p4, %p124_p11  ;;  %s921_s6 = smov [#allocation2]  }
  0x32   : > { %s136_s7 = sshll.u32 %s921_s6, 4  ;;  %s636_s8 = sshll.u32 %s152_s21, 4  ;;  %s1065_s7 = int_to_ptr.vmem [resolvable:$true] %s136_s7 }
  0x33   : > { %s1279_s5 = scalar_select %p1061_p12, 1, 0 }
  0x34   : > { %p691_p13 = pneg %p1061_p12  ;;  %s1082_s17 = scalar_lea.hbm %s1266_s2, %s654_s23 }
  0x35   : > { %s175_s18 = scalar_lea.vmem [#allocation7], %s636_s8  ;;  %s787_s21 = scalar_lea.hbm %s1264_s0, 512 }
  0x36   : > { %p1073_p0 = pnand %p691_p13, %p1268_p10  ;;  %s183_s20 = sshll.u32 %s175_s18, 4  ;;  %s1084_s20 = int_to_ptr.vmem [resolvable:$true] %s183_s20 }
  0x37   : > { %p788_p3 = scmp.ne.s32.totalorder %s1264_s0, %s787_s21  ;;  %p794_p11 = scmp.lt.u32.totalorder %s787_s21, %s1264_s0 }
  0x38   : > { %p789_p1 = pneg %p1073_p0 }
  0x3a   : > { %p790_p2 = pnand %p789_p1, %p788_p3 }
  0x3c   : > { %p791_p4 = pneg %p790_p2 }
  0x3e   : > { %p796_p13 = pnand %p794_p11, %p791_p4 }
  0x40   : > { %799 = shalt.err (!%p796_p13)
}
  0x41   : > { %s800_s23 = scalar_lea.vmem %s1065_s7, 512  ;;  %p808_p7 = scmp.lt.s32.totalorder %s1065_s7, %s1065_s7 }
  0x42   : > { %p801_p10 = scmp.ne.s32.totalorder %s1065_s7, %s800_s23  ;;  %p809_p5 = scmp.lt.s32.totalorder %s800_s23, %s800_s23 }
  0x44   : > { %p803_p8 = pnand %p801_p10, %p789_p1  ;;  %p810_p12 = por %p809_p5, %p808_p7 }
  0x46   : > { %p804_p9 = pneg %p803_p8 }
  0x48   : > { %p811_p6 = pnand %p810_p12, %p804_p9 }
  0x4a   : > { %814 = shalt.err (!%p811_p6)
}
  0x4b   : > { %s922_s8 = smov 128   ;;  %s923_s18 = smov 8  }
  0x4c   : > { %694 = dma.hbm_to_vmem [thread:$0]  (!%p1073_p0), %s1264_s0, 512, %s1065_s7, [#allocation3], %s922_s8, %s922_s8, %s923_s18  }
  0x4d   : > { %s815_s21 = scalar_lea.hbm %s1082_s17, 256  ;;  %p1281_p10 = scmp.ne.s32.totalorder %s1275_s29, 0 }
  0x4e   : > { %p816_p8 = scmp.ne.s32.totalorder %s1082_s17, %s815_s21  ;;  %s820_s10 = scalar_lea.hbm %s1266_s2, 512 }
  0x4f   : > { %p1282_p5 = pneg %p1281_p10  ;;  %p821_p9 = scmp.lt.u32.totalorder %s1082_s17, %s1266_s2 }
  0x50   : > { %p822_p12 = scmp.lt.u32.totalorder %s820_s10, %s815_s21  ;;  %p824_p1 = scmp.lt.u32.totalorder %s815_s21, %s1082_s17 }
  0x51   : > { %p818_p7 = pnand %p816_p8, %p1282_p5 }
  0x52   : > { %p823_p3 = por %p822_p12, %p821_p9 }
  0x53   : > { %p819_p6 = pneg %p818_p7 }
  0x54   : > { %p825_p2 = por %p824_p1, %p823_p3 }
  0x56   : > { %p826_p4 = pnand %p825_p2, %p819_p6 }
  0x58   : > { %829 = shalt.err (!%p826_p4)
}
  0x59   : > { %s830_s7 = scalar_lea.vmem %s1084_s20, 256  ;;  %p1283_p11 = pmov %p1282_p5 }
  0x5a   : > { %p831_p0 = scmp.ne.s32.totalorder %s1084_s20, %s830_s7  ;;  %s924_s9 = smov [#allocation7]  }
  0x5b   : > { %s835_s8 = sshll.u32 %s924_s9, 4  ;;  %s836_s8 = int_to_ptr.vmem [resolvable:$false] %s835_s8 }
  0x5c   : > { %p833_p13 = pnand %p831_p0, %p1283_p11  ;;  %s837_s18 = scalar_lea.vmem %s836_s8, 512 }
  0x5d   : > { %p838_p5 = scmp.lt.s32.totalorder %s1084_s20, %s836_s8  ;;  %p839_p7 = scmp.lt.s32.totalorder %s837_s18, %s830_s7 }
  0x5e   : > { %p834_p8 = pneg %p833_p13 }
  0x5f   : > { %p840_p9 = por %p839_p7, %p838_p5 }
  0x61   : > { %p841_p12 = pnand %p840_p9, %p834_p8 }
  0x63   : > { %844 = shalt.err (!%p841_p12)
}
  0x64   : > { %701 = dma.hbm_to_vmem [thread:$0]  (!%p1281_p10), %s1082_s17, 256, %s1084_s20, %s1006_s30  }
  0x65   : > { %p1284_p6 = scmp.ne.s32.totalorder %s1279_s5, 0 }
  0x66   : > { %p1285_p3 = scmp.eq.s32.totalorder (!%p1284_p6), %s1035_s25, 0 }
  0x67   : > { %192 = sbr.rel (%p1284_p6) target bundleno = 428 (0x1ac), region = 32 }
  0x6e   : > { %890 = dma.done.wait (%p1285_p3), [#allocation3], 512   ;;  %p1286_p1 = pmov %p1285_p3 }
  0x6f   : > { %s198_s22 = sand.u32 1, %s1035_s25   ;;  %s1139_s24 = sand.u32 1, %s907_s13  }
  0x70   : > { %892 = vsyncadd (%p1286_p1), [#allocation3], 4294966784  ;;  %s641_s29 = sshll.u32 %s1139_s24, 7  ;;  %s199_s21 = scalar_lea.sflag [#allocation6], %s198_s22 }
  0x71   : > { %s1142_s27 = scalar_lea.vmem [#allocation5], %s641_s29  ;;  %p1287_p10 = scmp.ne.s32.totalorder %s1276_s4, 0 }
  0x73   : > { %894 = dma.done.wait (%p1287_p10), %s199_s21, 2304  }
  0x74   : > { %896 = vsyncadd (%p1287_p10), %s199_s21, 4294964992  ;;  %v925_v0 = vmov 0.0   ;;  %v247_v1 = vld [vmem:[%s1142_s27 + $0x8] sm:$0xff]  ;;  %v249_v2 = vld [vmem:[%s1142_s27 + $0x18] sm:$0xff]  ;;  %vm262_vm0 = vcmask 523264   ;;  %s642_s30 = sshll.u32 %s1139_s24, 4 }
  0x75   : > { %339 = vmatprep.mubr.f32.mxu0 %v925_v0  ;;  %351 = vmatprep.mubr.f32.mxu1 %v925_v0  ;;  %v246_v3 = vld [vmem:[%s1142_s27] sm:$0xff]  ;;  %v657_v4 = vpack.c.bf16 %v249_v2, %v247_v1  ;;  %v248_v5 = vld [vmem:[%s1142_s27 + $0x10] sm:$0xff]  ;;  %v251_v6 = vld [vmem:[%s1142_s27 + $0x28] sm:$0xff]  ;;  %s211_s4 = scalar_lea.vmem [#allocation7], %s642_s30  ;;  %s643_s5 = sshll.u32 %s1139_s24, 6 }
  0x76   : > { %v253_v7 = vld [vmem:[%s1142_s27 + $0x38] sm:$0xff]  ;;  %v659_v8 = vpack.c.bf16 %v248_v5, %v246_v3  ;;  %v250_v10 = vld [vmem:[%s1142_s27 + $0x20] sm:$0xff]  ;;  %v252_v11 = vld [vmem:[%s1142_s27 + $0x30] sm:$0xff]  ;;  %s238_s17 = scalar_lea.vmem [#allocation8], %s643_s5  ;;  %s656_s6 = sshll.u32 %s1035_s25, 8 }
  0x77   : > { %v661_v9 = vpack.c.bf16 %v253_v7, %v251_v6  ;;  %v255_v12 = vld [vmem:[%s1142_s27 + $0x48] sm:$0xff]  ;;  %658 = vmatprep.subr.bf16.mxu0 %v657_v4  ;;  %673 = vmatprep.subr.bf16.mxu1 %v657_v4  ;;  %v257_v13 = vld [vmem:[%s1142_s27 + $0x58] sm:$0xff]  ;;  %v663_v14 = vpack.c.bf16 %v252_v11, %v250_v10  ;;  %v254_v16 = vld [vmem:[%s1142_s27 + $0x40] sm:$0xff]  ;;  %s524_s20 = sshll.u32 %s238_s17, 4  ;;  %s1220_s25 = scalar_lea.hbm %s1267_s3, %s656_s6  ;;  %s1215_s20 = int_to_ptr.vmem [resolvable:$true] %s524_s20 }
  0x78   : > { %660 = vmatpush1.bf16.msra.mxu0 %v659_v8  ;;  %677 = vmatpush1.bf16.msra.mxu1 %v659_v8  ;;  %v665_v15 = vpack.c.bf16 %v257_v13, %v255_v12  ;;  %v256_v17 = vld [vmem:[%s1142_s27 + $0x50] sm:$0xff]  ;;  %v259_v18 = vld [vmem:[%s1142_s27 + $0x68] sm:$0xff]  ;;  %v261_v19 = vld [vmem:[%s1142_s27 + $0x78] sm:$0xff]  ;;  %s511_s23 = scalar_lea.sflag [#allocation4], %s1139_s24  ;;  %s845_s7 = scalar_lea.vmem %s1215_s20, 1024 }
  0x79   : > { %662 = vmatprep.subr.bf16.mxu0 %v661_v9  ;;  %674 = vmatprep.subr.bf16.mxu1 %v661_v9  ;;  %v667_v20 = vpack.c.bf16 %v256_v17, %v254_v16  ;;  %v669_v21 = vpack.c.bf16 %v261_v19, %v259_v18  ;;  %v258_v22 = vld [vmem:[%s1142_s27 + $0x60] sm:$0xff]  ;;  %v260_v23 = vld [vmem:[%s1142_s27 + $0x70] sm:$0xff]  ;;  %v243_v27 = vld [vmem:[#allocation2 + $0x8] sm:$0xff]  ;;  %p846_p2 = scmp.ne.s32.totalorder %s1215_s20, %s845_s7  ;;  %p1288_p4 = scmp.ne.s32.totalorder %s1277_s26, 0 }
  0x7a   : > { %v671_v24 = vpack.c.bf16 %v260_v23, %v258_v22  ;;  %v242_v25 = vld [vmem:[#allocation2] sm:$0xff]  ;;  %v244_v26 = vld [vmem:[#allocation2 + $0x10] sm:$0xff]  ;;  %v245_v28 = vld [vmem:[#allocation2 + $0x18] sm:$0xff]  ;;  %s927_s9 = smov [#allocation8]  }
  0x7b   : > { %p847_p0 = pnand %p846_p2, %p1288_p4  ;;  %s849_s8 = sshll.u32 %s927_s9, 4  ;;  %s850_s8 = int_to_ptr.vmem [resolvable:$false] %s849_s8 }
  0x7c   : > { %664 = vmatpush1.bf16.msra.mxu0 %v663_v14  ;;  %678 = vmatpush1.bf16.msra.mxu1 %v663_v14  ;;  %s851_s18 = scalar_lea.vmem %s850_s8, 2048  ;;  %p852_p13 = scmp.lt.s32.totalorder %s1215_s20, %s850_s8 }
  0x7d   : > { %666 = vmatprep.subr.bf16.mxu0 %v665_v15  ;;  %675 = vmatprep.subr.bf16.mxu1 %v665_v15  ;;  %p848_p11 = pneg %p847_p0  ;;  %p853_p8 = scmp.lt.s32.totalorder %s851_s18, %s845_s7 }
  0x7f   : > { %p854_p5 = por %p853_p8, %p852_p13 }
  0x80   : > { %668 = vmatpush1.bf16.msra.mxu0 %v667_v20  ;;  %679 = vmatpush1.bf16.msra.mxu1 %v667_v20 }
  0x81   : > { %670 = vmatprep.subr.bf16.mxu0 %v669_v21  ;;  %676 = vmatprep.subr.bf16.mxu1 %v669_v21  ;;  %p855_p7 = pnand %p854_p5, %p848_p11 }
  0x84   : > { %672 = vmatpush1.bf16.msra.mxu0 %v671_v24  ;;  %680 = vmatpush1.bf16.msra.mxu1 %v671_v24  ;;  %v426_v24 = vlaneseq }
  0x87   : > { %644 = vmatmul.mubr.msk.f32.vlgmr.msra.gmra.mrb[0].mxu0 %vm262_vm0, %v242_v25  ;;  %646 = vmatmul.mubr.msk.f32.vlgmr.msra.gmra.mrb[0].mxu1 %vm262_vm0, %v244_v26 }
  0x88   : > { %345 = vmatprep.mubr.f32.mxu0 %v925_v0  ;;  %357 = vmatprep.mubr.f32.mxu1 %v925_v0 }
  0x8b   : > { %645 = vmatmul.mubr.msk.f32.gmra.mrb[2].mxu0 %vm262_vm0, %v243_v27  ;;  %647 = vmatmul.mubr.msk.f32.gmra.mrb[2].mxu1 %vm262_vm0, %v245_v28 }
 0x15a   : > { %v1164_v29 = vpop.f32.mrb[0].mxu0  ;;  %v1166_v30 = vpop.f32.mrb[0].mxu1 }
 0x15b   : > { %v1168_v31 = vpop.f32.mrb[1].mxu0  ;;  %v1170_v32 = vpop.f32.mrb[1].mxu1  ;;  %v384_v35 = vmul.f32 %v1164_v29, %v1164_v29  ;;  %v388_v43 = vmul.f32 %v1166_v30, %v1166_v30 }
 0x15c   : > { %v385_v40 = vmul.f32 %v1168_v31, %v1168_v31  ;;  %v389_v47 = vmul.f32 %v1170_v32, %v1170_v32 }
 0x15e   : > { %v1172_v33 = vpop.f32.mrb[2].mxu0  ;;  %v1174_v34 = vpop.f32.mrb[2].mxu1 }
 0x15f   : > { %v364_v36 = vadd.f32 %v1172_v33, %v1164_v29  ;;  %v386_v37 = vmul.f32 %v1172_v33, %v1172_v33  ;;  %v1182_v38 = vpop.f32.mrb[3].mxu0  ;;  %v1184_v39 = vpop.f32.mrb[3].mxu1  ;;  %v390_v46 = vmul.f32 %v1174_v34, %v1174_v34 }
 0x160   : > { %v373_v41 = vadd.f32 %v1182_v38, %v1168_v31  ;;  %v387_v42 = vmul.f32 %v1182_v38, %v1182_v38  ;;  %v391_v50 = vmul.f32 %v1184_v39, %v1184_v39 }
 0x161   : > { %v392_v44 = vadd.f32 %v386_v37, %v384_v35  ;;  %v365_v45 = vadd.f32 %v364_v36, %v1166_v30  ;;  %v427_v35 = vshrl.u32 %v426_v24, 7 }
 0x162   : > { %v401_v48 = vadd.f32 %v387_v42, %v385_v40  ;;  %v374_v49 = vadd.f32 %v373_v41, %v1170_v32  ;;  %v418_v40 = vld [vmem:[%s211_s4] ss:$8 sm:$0x3]  ;;  %v926_v42 = vmov 1966171168  }
 0x163   : > { %v366_v51 = vadd.f32 %v365_v45, %v1174_v34  ;;  %v393_v52 = vadd.f32 %v392_v44, %v388_v43  ;;  %v428_v37 = vsub.s32 0, %v427_v35  ;;  %v432_v41 = vsub.s32 1, %v427_v35 }
 0x164   : > { %v375_v53 = vadd.f32 %v374_v49, %v1184_v39  ;;  %v402_v54 = vadd.f32 %v401_v48, %v389_v47  ;;  %v444_v43 = vunpack.c.l.s4 %v926_v42 }
 0x165   : > { %v367_v55 = vrot.slane %v366_v51, 4  ;;  %v394_v56 = vadd.f32 %v393_v52, %v390_v46  ;;  %v429_v44 = vrot.slane %v418_v40, %v428_v37  ;;  %v433_v45 = vrot.slane %v418_v40, %v432_v41 }
 0x166   : > { %v376_v57 = vrot.slane %v375_v53, 4  ;;  %v403_v58 = vadd.f32 %v402_v54, %v391_v50  ;;  %v445_v47 = vunpack.c.0.s8 %v444_v43 }
 0x167   : > { %v368_v59 = vadd.f32 %v367_v55, %v366_v51  ;;  %v395_v60 = vrot.slane %v394_v56, 4 }
 0x168   : > { %v377_v61 = vadd.f32 %v376_v57, %v375_v53  ;;  %v404_v62 = vrot.slane %v403_v58, 4  ;;  %v448_v54 = vsub.s32 %v445_v47, %v427_v35 }
 0x169   : > { %v369_v63 = vrot.slane %v368_v59, 2  ;;  %v396_v0 = vadd.f32 %v395_v60, %v394_v56 }
 0x16a   : > { %v378_v1 = vrot.slane %v377_v61, 2  ;;  %v405_v2 = vadd.f32 %v404_v62, %v403_v58 }
 0x16b   : > { %v370_v3 = vadd.f32 %v369_v63, %v368_v59  ;;  %v397_v4 = vrot.slane %v396_v0, 2 }
 0x16c   : > { %v379_v5 = vadd.f32 %v378_v1, %v377_v61  ;;  %v406_v6 = vrot.slane %v405_v2, 2 }
 0x16d   : > { %v371_v7 = vrot.slane %v370_v3, 1  ;;  %v398_v8 = vadd.f32 %v397_v4, %v396_v0 }
 0x16e   : > { %v380_v9 = vrot.slane %v379_v5, 1  ;;  %v407_v10 = vadd.f32 %v406_v6, %v405_v2  ;;  %v648_v2 = vld [vmem:[%s211_s4 + $0x1] ss:$8 sm:$0x3] }
 0x16f   : > { %v372_v11 = vadd.f32 %v371_v7, %v370_v3  ;;  %v399_v12 = vrot.slane %v398_v8, 1 }
 0x170   : > { %v381_v13 = vadd.f32 %v380_v9, %v379_v5  ;;  %v408_v14 = vrot.slane %v407_v10, 1 }
 0x171   : > { %v382_v15 = vmul.f32 0.03125, %v372_v11  ;;  %v400_v16 = vadd.f32 %v399_v12, %v398_v8 }
 0x172   : > { %v383_v17 = vmul.f32 0.03125, %v381_v13  ;;  %v409_v18 = vadd.f32 %v408_v14, %v407_v10 }
 0x173   : > { %v410_v19 = vmul.f32 0.03125, %v400_v16  ;;  %v412_v20 = vmul.f32 %v382_v15, %v382_v15 }
 0x174   : > { %v411_v21 = vmul.f32 0.03125, %v409_v18  ;;  %v413_v22 = vmul.f32 %v383_v17, %v383_v17 }
 0x175   : > { %v414_v23 = vsub.f32 %v410_v19, %v412_v20 }
 0x176   : > { %v415_v25 = vsub.f32 %v411_v21, %v413_v22 }
 0x177   : > { %v416_v26 = vmax.f32 %v414_v23, 0.0 }
 0x178   : > { %v417_v27 = vmax.f32 %v415_v25, 0.0 }
 0x179   : > { %v421_v28 = vadd.f32 1e-05, %v416_v26 }
 0x17a   : > { %v422_v36 = vadd.f32 1e-05, %v417_v27 }
 0x17b   : > { %753 = vrsqrt.f32 %v421_v28 }
 0x17c   : > { %755 = vrsqrt.f32 %v422_v36 }
 0x185   : > { %v754_v46 = vpop.eup %753 }
 0x186   : > { %v756_v48 = vpop.eup %755  ;;  %v436_v49 = vmul.f32 %v754_v46, %v429_v44 }
 0x187   : > { %v437_v50 = vmul.f32 %v756_v48, %v433_v45 }
 0x188   : > { %v438_v51 = vmul.f32 %v436_v49, %v382_v15  ;;  %v462_v52 = vrot.slane %v436_v49, %v428_v37 }
 0x189   : > { %v439_v53 = vmul.f32 %v437_v50, %v383_v17  ;;  %v466_v55 = vrot.slane %v437_v50, %v428_v37 }
 0x18a   : > { %v467_v56 = vmul.f32 %v462_v52, %v1164_v29  ;;  %v469_v57 = vmul.f32 %v462_v52, %v1172_v33  ;;  %v471_v58 = vmul.f32 %v462_v52, %v1166_v30  ;;  %v473_v59 = vmul.f32 %v462_v52, %v1174_v34 }
 0x18b   : > { %v442_v60 = vcombine.low %v438_v51, %v439_v53  ;;  %v468_v61 = vmul.f32 %v466_v55, %v1168_v31  ;;  %v470_v62 = vmul.f32 %v466_v55, %v1182_v38  ;;  %v472_v63 = vmul.f32 %v466_v55, %v1170_v32 }
 0x18c   : > { %v474_v0 = vmul.f32 %v466_v55, %v1184_v39 }
 0x18d   : > { %v449_v1 = vrot.slane %v442_v60, %v448_v54 }
 0x18f   : > { %v456_v29 = vrot.slane %v449_v1, %v448_v54 }
 0x191   : > { %v458_v3 = vsub.f32 %v648_v2, %v456_v29 }
 0x193   : > { %v479_v33 = vrot.slane %v458_v3, %v428_v37  ;;  %v483_v4 = vrot.slane %v458_v3, %v432_v41 }
 0x195   : > { %v486_v30 = vadd.f32 %v479_v33, %v467_v56  ;;  %v487_v34 = vadd.f32 %v483_v4, %v468_v61  ;;  %v488_v5 = vadd.f32 %v479_v33, %v469_v57  ;;  %v489_v31 = vadd.f32 %v483_v4, %v470_v62 }
 0x196   : > { %v490_v6 = vadd.f32 %v479_v33, %v471_v58  ;;  %v491_v38 = vadd.f32 %v483_v4, %v472_v63  ;;  %v492_v7 = vadd.f32 %v479_v33, %v473_v59  ;;  %v493_v32 = vadd.f32 %v483_v4, %v474_v0 }
 0x197   : > { %v494_v39 = vmax.f32 %v486_v30, 0.0  ;;  %v495_v8 = vmax.f32 %v487_v34, 0.0  ;;  %v496_v9 = vmax.f32 %v488_v5, 0.0  ;;  %v497_v10 = vmax.f32 %v489_v31, 0.0 }
 0x198   : > { %v498_v11 = vmax.f32 %v490_v6, 0.0  ;;  %v499_v12 = vmax.f32 %v491_v38, 0.0  ;;  %v500_v13 = vmax.f32 %v492_v7, 0.0  ;;  %v501_v14 = vmax.f32 %v493_v32, 0.0 }
 0x199   : > { %502 = vst [vmem:[%s238_s17] sm:$0xff] %v494_v39  ;;  %503 = vst [vmem:[%s238_s17 + $0x8] sm:$0xff] %v495_v8 }
 0x19a   : > { %504 = vst [vmem:[%s238_s17 + $0x10] sm:$0xff] %v496_v9  ;;  %505 = vst [vmem:[%s238_s17 + $0x18] sm:$0xff] %v497_v10 }
 0x19b   : > { %506 = vst [vmem:[%s238_s17 + $0x20] sm:$0xff] %v498_v11  ;;  %507 = vst [vmem:[%s238_s17 + $0x28] sm:$0xff] %v499_v12 }
 0x19c   : > { %508 = vst [vmem:[%s238_s17 + $0x30] sm:$0xff] %v500_v13  ;;  %509 = vst [vmem:[%s238_s17 + $0x38] sm:$0xff] %v501_v14 }
 0x19d   : > { %858 = shalt.err (!%p855_p7)
}
 0x19e   : > { %s859_s22 = scalar_lea.hbm %s1220_s25, 1024  ;;  %s863_s27 = scalar_lea.hbm %s1267_s3, 2048 }
 0x19f   : > { %p860_p9 = scmp.ne.s32.totalorder %s1220_s25, %s859_s22  ;;  %p864_p3 = scmp.lt.u32.totalorder %s1220_s25, %s1267_s3 }
 0x1a0   : > { %p865_p1 = scmp.lt.u32.totalorder %s863_s27, %s859_s22  ;;  %p867_p2 = scmp.lt.u32.totalorder %s859_s22, %s1220_s25 }
 0x1a1   : > { %p861_p12 = pnand %p860_p9, %p1288_p4 }
 0x1a2   : > { %p866_p10 = por %p865_p1, %p864_p3 }
 0x1a3   : > { %p862_p6 = pneg %p861_p12 }
 0x1a4   : > { %p868_p0 = por %p867_p2, %p866_p10 }
 0x1a6   : > { %p869_p11 = pnand %p868_p0, %p862_p6 }
 0x1a8   : > { %872 = shalt.err (!%p869_p11)
}
 0x1a9   : > { %s928_s5 = smov 256   ;;  %s929_s17 = smov 512  }
 0x1aa   : > { %s930_s6 = smov 16  }
 0x1ab   : > { %689 = dma.vmem_to_hbm [thread:$0]  (%p1288_p4), %s1215_s20, 1024, %s1220_s25, %s511_s23, %s928_s5, %s929_s17, %s930_s6  }
 0x1ac PF: > { %s539_s10 = sand.u32 1, %s903_s12   ;;  %p1289_p13 = scmp.ne.s32.totalorder %s1278_s28, 0 }
 0x1ad   : > { %p1290_p8 = scmp.ge.s32.totalorder %s915_s15, 2  ;;  %s540_s11 = scalar_lea.sflag [#allocation4], %s539_s10 }
 0x1af   : > { %p703_p5 = pnand %p1290_p8, %p1289_p13 }
 0x1b1   : > { %898 = dma.done.wait (!%p703_p5), %s540_s11, 1024  }
 0x1b2   : > { %900 = vsyncadd (!%p703_p5), %s540_s11, 4294966272  ;;  %p17_p7 = scmp.ge.s32.totalorder %s972_s16, 4   ;;  %s1291_s12 = smov %s907_s13 }
 0x1b3   : > { %s1292_s13 = smov %s911_s14  ;;  %s1293_s14 = smov %s983_s19 }
 0x1b4   : > { %s1294_s15 = smov %s972_s16  ;;  %19 = sbr.rel (!%p17_p7) target bundleno = 6 (0x6), region = 94 }
 0x1bb   :  { %545 = vsyncpa [#allocation3], 1 }
 0x1bc   :  { %547 = vsyncpa [#allocation3 + $0x1], 1 }
 0x1bd   :  { %548 = vsyncpa [#allocation6], 1 }
 0x1be   :  { %550 = vsyncpa [#allocation6 + $0x1], 1 }
 0x1bf   :  { %551 = vsyncpa [#allocation4], 1 }
 0x1c0   :  { %553 = vsyncpa [#allocation4 + $0x1], 1 }

// kernel: tpu_custom_call.1
= control target key start
LH: loop header
LB: loop body
LE: loop exit
PB: predicated region body
PF: predicated region fallthrough
CT: control target
= control target key end

     0   :  { %8 = vsyncpa [#allocation3], 0  ;;  %s1264_s0 = inlined_call_operand.hbm [shape: f32[32,64], index: 0, kind: input, shape index: {}]   ;;  %s1265_s1 = inlined_call_operand.hbm [shape: f32[64,512], index: 1, kind: input, shape index: {}]   ;;  %s1266_s2 = inlined_call_operand.hbm [shape: f32[8,512], index: 2, kind: input, shape index: {}]   ;;  %s1267_s3 = inlined_call_operand.hbm [shape: f32[32,512], index: 3, kind: output, shape index: {}]  }
   0x1   :  { %9 = vsyncpa [#allocation6], 0 }
   0x2   :  { %11 = vsyncpa [#allocation6 + $0x1], 0 }
   0x3   :  { %12 = vsyncpa [#allocation4], 0 }
   0x4   :  { %14 = vsyncpa [#allocation4 + $0x1], 0  ;;  %s951_s12 = smov 0   ;;  %s953_s13 = smov 0  }
   0x5   :  { %s955_s14 = smov 0   ;;  %s957_s15 = smov 0  }
   0x6 LB: > { %s972_s16 = sadd.s32 1, %s915_s15   ;;  %s48_s17 = sadd.s32 1, %s911_s14  ;;  %s915_s15 = sphi %s957_s15, %s1294_s15   ;;  %s911_s14 = sphi %s955_s14, %s1293_s14   ;;  %s907_s13 = sphi %s953_s13, %s1292_s13   ;;  %s903_s12 = sphi %s951_s12, %s1291_s12  }
   0x7   : > { %s45_s18 = ssub.s32 %s915_s15, %s972_s16  ;;  %p55_p0 = scmp.ne.s32.totalorder %s911_s14, %s907_s13 }
   0x8   : > { %p46_p1 = scmp.eq.s32.totalorder %s45_s18, 0  ;;  %p56_p2 = scmp.eq.s32.totalorder %s915_s15, 0 }
   0x9   : > { %p707_p4 = scmp.lt.s32.totalorder %s915_s15, 2  ;;  %s150_s20 = sand.u32 1, %s915_s15  }
   0xa   : > { %s983_s19 = scalar_select %p46_p1, %s911_s14, %s48_s17  }
   0xb   : > { %p57_p5 = por %p56_p2, %p55_p0  ;;  %s152_s21 = sand.u32 1, %s911_s14  }
   0xc   : > { %s633_s22 = sshll.u32 %s152_s21, 7  ;;  %s654_s23 = sshll.u32 %s915_s15, 8 }
   0xd   : > { %s998_s26 = scalar_lea.hbm %s1265_s1, %s654_s23  ;;  %s154_s27 = scalar_lea.vmem [#allocation5], %s633_s22 }
   0xe   : > { %s161_s28 = sshll.u32 %s154_s27, 4  ;;  %p1000_p6 = pnand %p707_p4, %p57_p5  ;;  %s1004_s28 = int_to_ptr.vmem [resolvable:$true] %s161_s28 }
   0xf   : > { %s1006_s30 = scalar_lea.sflag [#allocation6], %s150_s20  ;;  %s757_s4 = scalar_lea.hbm %s998_s26, 2048 }
  0x10   : > { %s1275_s29 = scalar_select %p1000_p6, 1, 0 }
  0x11   : > { %p758_p7 = scmp.ne.s32.totalorder %s998_s26, %s757_s4  ;;  %p1269_p8 = pneg %p1000_p6 }
  0x12   : > { %s762_s7 = scalar_lea.hbm %s1265_s1, 4096  ;;  %p763_p11 = scmp.lt.u32.totalorder %s998_s26, %s1265_s1 }
  0x13   : > { %p760_p9 = pnand %p1269_p8, %p758_p7  ;;  %p764_p12 = scmp.lt.u32.totalorder %s762_s7, %s757_s4 }
  0x14   : > { %p766_p1 = scmp.lt.u32.totalorder %s757_s4, %s998_s26 }
  0x15   : > { %p761_p10 = pneg %p760_p9  ;;  %p765_p13 = por %p764_p12, %p763_p11 }
  0x17   : > { %p767_p2 = por %p766_p1, %p765_p13 }
  0x19   : > { %p768_p4 = pnand %p767_p2, %p761_p10 }
  0x1b   : > { %771 = shalt.err (!%p768_p4)
}
  0x1c   : > { %s772_s10 = scalar_lea.vmem %s1004_s28, 2048  ;;  %s917_s11 = smov [#allocation5]  }
  0x1d   : > { %p773_p5 = scmp.ne.s32.totalorder %s1004_s28, %s772_s10  ;;  %s777_s17 = sshll.u32 %s917_s11, 4  ;;  %s778_s17 = int_to_ptr.vmem [resolvable:$false] %s777_s17 }
  0x1e   : > { %s779_s18 = scalar_lea.vmem %s778_s17, 4096  ;;  %p780_p3 = scmp.lt.s32.totalorder %s1004_s28, %s778_s17 }
  0x1f   : > { %p775_p7 = pnand %p773_p5, %p1269_p8  ;;  %p781_p11 = scmp.lt.s32.totalorder %s779_s18, %s772_s10 }
  0x21   : > { %p776_p9 = pneg %p775_p7  ;;  %p782_p12 = por %p781_p11, %p780_p3 }
  0x23   : > { %p783_p13 = pnand %p782_p12, %p776_p9 }
  0x25   : > { %786 = shalt.err (!%p783_p13)
}
  0x26   : > { %s918_s20 = smov 512   ;;  %s919_s22 = smov 256  }
  0x27   : > { %s920_s24 = smov 16   ;;  %s1035_s25 = sadd.s32 4294967295, %s915_s15  }
  0x28   : > { %698 = dma.hbm_to_vmem [thread:$0]  (!%p1000_p6), %s998_s26, 2048, %s1004_s28, %s1006_s30, %s918_s20, %s919_s22, %s920_s24  }
  0x29   : > { %s629_s27 = sadd.s32 4294967294, %s915_s15   ;;  %p61_p3 = scmp.ne.s32.totalorder %s907_s13, %s903_s12 }
  0x2a   : > { %p1268_p10 = scmp.eq.s32.totalorder %s1035_s25, 0  ;;  %p111_p1 = scmp.eq.s32.totalorder %s1035_s25, 1 }
  0x2b   : > { %p117_p2 = scmp.eq.s32.totalorder %s629_s27, 1  ;;  %p630_p4 = scmp.ge.s32.totalorder %s915_s15, 1 }
  0x2c   : > { %p1045_p5 = por %p1268_p10, %p61_p3  ;;  %p1052_p7 = por %p111_p1, %p55_p0 }
  0x2d   : > { %p1056_p9 = por %p117_p2, %p61_p3  ;;  %p124_p11 = scmp.lt.s32.totalorder %s915_s15, 3 }
  0x2e   : > { %s1276_s4 = scalar_select %p1045_p5, 1, 0 }
  0x2f   : > { %s1277_s26 = scalar_select %p1052_p7, 1, 0 }
  0x30   : > { %s1278_s28 = scalar_select %p1056_p9, 1, 0 }
  0x31   : > { %p1061_p12 = pnand %p630_p4, %p124_p11  ;;  %s921_s6 = smov [#allocation2]  }
  0x32   : > { %s136_s7 = sshll.u32 %s921_s6, 4  ;;  %s636_s8 = sshll.u32 %s152_s21, 4  ;;  %s1065_s7 = int_to_ptr.vmem [resolvable:$true] %s136_s7 }
  0x33   : > { %s1279_s5 = scalar_select %p1061_p12, 1, 0 }
  0x34   : > { %p691_p13 = pneg %p1061_p12  ;;  %s1082_s17 = scalar_lea.hbm %s1266_s2, %s654_s23 }
  0x35   : > { %s175_s18 = scalar_lea.vmem [#allocation7], %s636_s8  ;;  %s787_s21 = scalar_lea.hbm %s1264_s0, 512 }
  0x36   : > { %p1073_p0 = pnand %p691_p13, %p1268_p10  ;;  %s183_s20 = sshll.u32 %s175_s18, 4  ;;  %s1084_s20 = int_to_ptr.vmem [resolvable:$true] %s183_s20 }
  0x37   : > { %p788_p3 = scmp.ne.s32.totalorder %s1264_s0, %s787_s21  ;;  %p794_p11 = scmp.lt.u32.totalorder %s787_s21, %s1264_s0 }
  0x38   : > { %p789_p1 = pneg %p1073_p0 }
  0x3a   : > { %p790_p2 = pnand %p789_p1, %p788_p3 }
  0x3c   : > { %p791_p4 = pneg %p790_p2 }
  0x3e   : > { %p796_p13 = pnand %p794_p11, %p791_p4 }
  0x40   : > { %799 = shalt.err (!%p796_p13)
}
  0x41   : > { %s800_s23 = scalar_lea.vmem %s1065_s7, 512  ;;  %p808_p7 = scmp.lt.s32.totalorder %s1065_s7, %s1065_s7 }
  0x42   : > { %p801_p10 = scmp.ne.s32.totalorder %s1065_s7, %s800_s23  ;;  %p809_p5 = scmp.lt.s32.totalorder %s800_s23, %s800_s23 }
  0x44   : > { %p803_p8 = pnand %p801_p10, %p789_p1  ;;  %p810_p12 = por %p809_p5, %p808_p7 }
  0x46   : > { %p804_p9 = pneg %p803_p8 }
  0x48   : > { %p811_p6 = pnand %p810_p12, %p804_p9 }
  0x4a   : > { %814 = shalt.err (!%p811_p6)
}
  0x4b   : > { %s922_s8 = smov 128   ;;  %s923_s18 = smov 8  }
  0x4c   : > { %694 = dma.hbm_to_vmem [thread:$0]  (!%p1073_p0), %s1264_s0, 512, %s1065_s7, [#allocation3], %s922_s8, %s922_s8, %s923_s18  }
  0x4d   : > { %s815_s21 = scalar_lea.hbm %s1082_s17, 256  ;;  %p1281_p10 = scmp.ne.s32.totalorder %s1275_s29, 0 }
  0x4e   : > { %p816_p8 = scmp.ne.s32.totalorder %s1082_s17, %s815_s21  ;;  %s820_s10 = scalar_lea.hbm %s1266_s2, 512 }
  0x4f   : > { %p1282_p5 = pneg %p1281_p10  ;;  %p821_p9 = scmp.lt.u32.totalorder %s1082_s17, %s1266_s2 }
  0x50   : > { %p822_p12 = scmp.lt.u32.totalorder %s820_s10, %s815_s21  ;;  %p824_p1 = scmp.lt.u32.totalorder %s815_s21, %s1082_s17 }
  0x51   : > { %p818_p7 = pnand %p816_p8, %p1282_p5 }
  0x52   : > { %p823_p3 = por %p822_p12, %p821_p9 }
  0x53   : > { %p819_p6 = pneg %p818_p7 }
  0x54   : > { %p825_p2 = por %p824_p1, %p823_p3 }
  0x56   : > { %p826_p4 = pnand %p825_p2, %p819_p6 }
  0x58   : > { %829 = shalt.err (!%p826_p4)
}
  0x59   : > { %s830_s7 = scalar_lea.vmem %s1084_s20, 256  ;;  %p1283_p11 = pmov %p1282_p5 }
  0x5a   : > { %p831_p0 = scmp.ne.s32.totalorder %s1084_s20, %s830_s7  ;;  %s924_s9 = smov [#allocation7]  }
  0x5b   : > { %s835_s8 = sshll.u32 %s924_s9, 4  ;;  %s836_s8 = int_to_ptr.vmem [resolvable:$false] %s835_s8 }
  0x5c   : > { %p833_p13 = pnand %p831_p0, %p1283_p11  ;;  %s837_s18 = scalar_lea.vmem %s836_s8, 512 }
  0x5d   : > { %p838_p5 = scmp.lt.s32.totalorder %s1084_s20, %s836_s8  ;;  %p839_p7 = scmp.lt.s32.totalorder %s837_s18, %s830_s7 }
  0x5e   : > { %p834_p8 = pneg %p833_p13 }
  0x5f   : > { %p840_p9 = por %p839_p7, %p838_p5 }
  0x61   : > { %p841_p12 = pnand %p840_p9, %p834_p8 }
  0x63   : > { %844 = shalt.err (!%p841_p12)
}
  0x64   : > { %701 = dma.hbm_to_vmem [thread:$0]  (!%p1281_p10), %s1082_s17, 256, %s1084_s20, %s1006_s30  }
  0x65   : > { %p1284_p6 = scmp.ne.s32.totalorder %s1279_s5, 0 }
  0x66   : > { %p1285_p3 = scmp.eq.s32.totalorder (!%p1284_p6), %s1035_s25, 0 }
  0x67   : > { %192 = sbr.rel (%p1284_p6) target bundleno = 428 (0x1ac), region = 32 }
  0x6e   : > { %890 = dma.done.wait (%p1285_p3), [#allocation3], 512   ;;  %p1286_p1 = pmov %p1285_p3 }
  0x6f   : > { %s198_s22 = sand.u32 1, %s1035_s25   ;;  %s1139_s24 = sand.u32 1, %s907_s13  }
  0x70   : > { %892 = vsyncadd (%p1286_p1), [#allocation3], 4294966784  ;;  %s641_s29 = sshll.u32 %s1139_s24, 7  ;;  %s199_s21 = scalar_lea.sflag [#allocation6], %s198_s22 }
  0x71   : > { %s1142_s27 = scalar_lea.vmem [#allocation5], %s641_s29  ;;  %p1287_p10 = scmp.ne.s32.totalorder %s1276_s4, 0 }
  0x73   : > { %894 = dma.done.wait (%p1287_p10), %s199_s21, 2304  }
  0x74   : > { %896 = vsyncadd (%p1287_p10), %s199_s21, 4294964992  ;;  %v925_v0 = vmov 0.0   ;;  %v247_v1 = vld [vmem:[%s1142_s27 + $0x8] sm:$0xff]  ;;  %v249_v2 = vld [vmem:[%s1142_s27 + $0x18] sm:$0xff]  ;;  %vm262_vm0 = vcmask 523264   ;;  %s642_s30 = sshll.u32 %s1139_s24, 4 }
  0x75   : > { %339 = vmatprep.mubr.f32.mxu0 %v925_v0  ;;  %351 = vmatprep.mubr.f32.mxu1 %v925_v0  ;;  %v246_v3 = vld [vmem:[%s1142_s27] sm:$0xff]  ;;  %v657_v4 = vpack.c.bf16 %v249_v2, %v247_v1  ;;  %v248_v5 = vld [vmem:[%s1142_s27 + $0x10] sm:$0xff]  ;;  %v251_v6 = vld [vmem:[%s1142_s27 + $0x28] sm:$0xff]  ;;  %s211_s4 = scalar_lea.vmem [#allocation7], %s642_s30  ;;  %s643_s5 = sshll.u32 %s1139_s24, 6 }
  0x76   : > { %v253_v7 = vld [vmem:[%s1142_s27 + $0x38] sm:$0xff]  ;;  %v659_v8 = vpack.c.bf16 %v248_v5, %v246_v3  ;;  %v250_v10 = vld [vmem:[%s1142_s27 + $0x20] sm:$0xff]  ;;  %v252_v11 = vld [vmem:[%s1142_s27 + $0x30] sm:$0xff]  ;;  %s238_s17 = scalar_lea.vmem [#allocation8], %s643_s5  ;;  %s656_s6 = sshll.u32 %s1035_s25, 8 }
  0x77   : > { %v661_v9 = vpack.c.bf16 %v253_v7, %v251_v6  ;;  %v255_v12 = vld [vmem:[%s1142_s27 + $0x48] sm:$0xff]  ;;  %658 = vmatprep.subr.bf16.mxu0 %v657_v4  ;;  %673 = vmatprep.subr.bf16.mxu1 %v657_v4  ;;  %v257_v13 = vld [vmem:[%s1142_s27 + $0x58] sm:$0xff]  ;;  %v663_v14 = vpack.c.bf16 %v252_v11, %v250_v10  ;;  %v254_v16 = vld [vmem:[%s1142_s27 + $0x40] sm:$0xff]  ;;  %s524_s20 = sshll.u32 %s238_s17, 4  ;;  %s1220_s25 = scalar_lea.hbm %s1267_s3, %s656_s6  ;;  %s1215_s20 = int_to_ptr.vmem [resolvable:$true] %s524_s20 }
  0x78   : > { %660 = vmatpush1.bf16.msra.mxu0 %v659_v8  ;;  %677 = vmatpush1.bf16.msra.mxu1 %v659_v8  ;;  %v665_v15 = vpack.c.bf16 %v257_v13, %v255_v12  ;;  %v256_v17 = vld [vmem:[%s1142_s27 + $0x50] sm:$0xff]  ;;  %v259_v18 = vld [vmem:[%s1142_s27 + $0x68] sm:$0xff]  ;;  %v261_v19 = vld [vmem:[%s1142_s27 + $0x78] sm:$0xff]  ;;  %s511_s23 = scalar_lea.sflag [#allocation4], %s1139_s24  ;;  %s845_s7 = scalar_lea.vmem %s1215_s20, 1024 }
  0x79   : > { %662 = vmatprep.subr.bf16.mxu0 %v661_v9  ;;  %674 = vmatprep.subr.bf16.mxu1 %v661_v9  ;;  %v667_v20 = vpack.c.bf16 %v256_v17, %v254_v16  ;;  %v669_v21 = vpack.c.bf16 %v261_v19, %v259_v18  ;;  %v258_v22 = vld [vmem:[%s1142_s27 + $0x60] sm:$0xff]  ;;  %v260_v23 = vld [vmem:[%s1142_s27 + $0x70] sm:$0xff]  ;;  %v243_v27 = vld [vmem:[#allocation2 + $0x8] sm:$0xff]  ;;  %p846_p2 = scmp.ne.s32.totalorder %s1215_s20, %s845_s7  ;;  %p1288_p4 = scmp.ne.s32.totalorder %s1277_s26, 0 }
  0x7a   : > { %v671_v24 = vpack.c.bf16 %v260_v23, %v258_v22  ;;  %v242_v25 = vld [vmem:[#allocation2] sm:$0xff]  ;;  %v244_v26 = vld [vmem:[#allocation2 + $0x10] sm:$0xff]  ;;  %v245_v28 = vld [vmem:[#allocation2 + $0x18] sm:$0xff]  ;;  %s927_s9 = smov [#allocation8]  }
  0x7b   : > { %p847_p0 = pnand %p846_p2, %p1288_p4  ;;  %s849_s8 = sshll.u32 %s927_s9, 4  ;;  %s850_s8 = int_to_ptr.vmem [resolvable:$false] %s849_s8 }
  0x7c   : > { %664 = vmatpush1.bf16.msra.mxu0 %v663_v14  ;;  %678 = vmatpush1.bf16.msra.mxu1 %v663_v14  ;;  %s851_s18 = scalar_lea.vmem %s850_s8, 2048  ;;  %p852_p13 = scmp.lt.s32.totalorder %s1215_s20, %s850_s8 }
  0x7d   : > { %666 = vmatprep.subr.bf16.mxu0 %v665_v15  ;;  %675 = vmatprep.subr.bf16.mxu1 %v665_v15  ;;  %p848_p11 = pneg %p847_p0  ;;  %p853_p8 = scmp.lt.s32.totalorder %s851_s18, %s845_s7 }
  0x7f   : > { %p854_p5 = por %p853_p8, %p852_p13 }
  0x80   : > { %668 = vmatpush1.bf16.msra.mxu0 %v667_v20  ;;  %679 = vmatpush1.bf16.msra.mxu1 %v667_v20 }
  0x81   : > { %670 = vmatprep.subr.bf16.mxu0 %v669_v21  ;;  %676 = vmatprep.subr.bf16.mxu1 %v669_v21  ;;  %p855_p7 = pnand %p854_p5, %p848_p11 }
  0x84   : > { %672 = vmatpush1.bf16.msra.mxu0 %v671_v24  ;;  %680 = vmatpush1.bf16.msra.mxu1 %v671_v24  ;;  %v426_v24 = vlaneseq }
  0x87   : > { %644 = vmatmul.mubr.msk.f32.vlgmr.msra.gmra.mrb[0].mxu0 %vm262_vm0, %v242_v25  ;;  %646 = vmatmul.mubr.msk.f32.vlgmr.msra.gmra.mrb[0].mxu1 %vm262_vm0, %v244_v26 }
  0x88   : > { %345 = vmatprep.mubr.f32.mxu0 %v925_v0  ;;  %357 = vmatprep.mubr.f32.mxu1 %v925_v0 }
  0x8b   : > { %645 = vmatmul.mubr.msk.f32.gmra.mrb[2].mxu0 %vm262_vm0, %v243_v27  ;;  %647 = vmatmul.mubr.msk.f32.gmra.mrb[2].mxu1 %vm262_vm0, %v245_v28 }
 0x15a   : > { %v1164_v29 = vpop.f32.mrb[0].mxu0  ;;  %v1166_v30 = vpop.f32.mrb[0].mxu1 }
 0x15b   : > { %v1168_v31 = vpop.f32.mrb[1].mxu0  ;;  %v1170_v32 = vpop.f32.mrb[1].mxu1  ;;  %v384_v35 = vmul.f32 %v1164_v29, %v1164_v29  ;;  %v388_v43 = vmul.f32 %v1166_v30, %v1166_v30 }
 0x15c   : > { %v385_v40 = vmul.f32 %v1168_v31, %v1168_v31  ;;  %v389_v47 = vmul.f32 %v1170_v32, %v1170_v32 }
 0x15e   : > { %v1172_v33 = vpop.f32.mrb[2].mxu0  ;;  %v1174_v34 = vpop.f32.mrb[2].mxu1 }
 0x15f   : > { %v364_v36 = vadd.f32 %v1172_v33, %v1164_v29  ;;  %v386_v37 = vmul.f32 %v1172_v33, %v1172_v33  ;;  %v1182_v38 = vpop.f32.mrb[3].mxu0  ;;  %v1184_v39 = vpop.f32.mrb[3].mxu1  ;;  %v390_v46 = vmul.f32 %v1174_v34, %v1174_v34 }
 0x160   : > { %v373_v41 = vadd.f32 %v1182_v38, %v1168_v31  ;;  %v387_v42 = vmul.f32 %v1182_v38, %v1182_v38  ;;  %v391_v50 = vmul.f32 %v1184_v39, %v1184_v39 }
 0x161   : > { %v392_v44 = vadd.f32 %v386_v37, %v384_v35  ;;  %v365_v45 = vadd.f32 %v364_v36, %v1166_v30  ;;  %v427_v35 = vshrl.u32 %v426_v24, 7 }
 0x162   : > { %v401_v48 = vadd.f32 %v387_v42, %v385_v40  ;;  %v374_v49 = vadd.f32 %v373_v41, %v1170_v32  ;;  %v418_v40 = vld [vmem:[%s211_s4] ss:$8 sm:$0x3]  ;;  %v926_v42 = vmov 1966171168  }
 0x163   : > { %v366_v51 = vadd.f32 %v365_v45, %v1174_v34  ;;  %v393_v52 = vadd.f32 %v392_v44, %v388_v43  ;;  %v428_v37 = vsub.s32 0, %v427_v35  ;;  %v432_v41 = vsub.s32 1, %v427_v35 }
 0x164   : > { %v375_v53 = vadd.f32 %v374_v49, %v1184_v39  ;;  %v402_v54 = vadd.f32 %v401_v48, %v389_v47  ;;  %v444_v43 = vunpack.c.l.s4 %v926_v42 }
 0x165   : > { %v367_v55 = vrot.slane %v366_v51, 4  ;;  %v394_v56 = vadd.f32 %v393_v52, %v390_v46  ;;  %v429_v44 = vrot.slane %v418_v40, %v428_v37  ;;  %v433_v45 = vrot.slane %v418_v40, %v432_v41 }
 0x166   : > { %v376_v57 = vrot.slane %v375_v53, 4  ;;  %v403_v58 = vadd.f32 %v402_v54, %v391_v50  ;;  %v445_v47 = vunpack.c.0.s8 %v444_v43 }
 0x167   : > { %v368_v59 = vadd.f32 %v367_v55, %v366_v51  ;;  %v395_v60 = vrot.slane %v394_v56, 4 }
 0x168   : > { %v377_v61 = vadd.f32 %v376_v57, %v375_v53  ;;  %v404_v62 = vrot.slane %v403_v58, 4  ;;  %v448_v54 = vsub.s32 %v445_v47, %v427_v35 }
 0x169   : > { %v369_v63 = vrot.slane %v368_v59, 2  ;;  %v396_v0 = vadd.f32 %v395_v60, %v394_v56 }
 0x16a   : > { %v378_v1 = vrot.slane %v377_v61, 2  ;;  %v405_v2 = vadd.f32 %v404_v62, %v403_v58 }
 0x16b   : > { %v370_v3 = vadd.f32 %v369_v63, %v368_v59  ;;  %v397_v4 = vrot.slane %v396_v0, 2 }
 0x16c   : > { %v379_v5 = vadd.f32 %v378_v1, %v377_v61  ;;  %v406_v6 = vrot.slane %v405_v2, 2 }
 0x16d   : > { %v371_v7 = vrot.slane %v370_v3, 1  ;;  %v398_v8 = vadd.f32 %v397_v4, %v396_v0 }
 0x16e   : > { %v380_v9 = vrot.slane %v379_v5, 1  ;;  %v407_v10 = vadd.f32 %v406_v6, %v405_v2  ;;  %v648_v2 = vld [vmem:[%s211_s4 + $0x1] ss:$8 sm:$0x3] }
 0x16f   : > { %v372_v11 = vadd.f32 %v371_v7, %v370_v3  ;;  %v399_v12 = vrot.slane %v398_v8, 1 }
 0x170   : > { %v381_v13 = vadd.f32 %v380_v9, %v379_v5  ;;  %v408_v14 = vrot.slane %v407_v10, 1 }
 0x171   : > { %v382_v15 = vmul.f32 0.03125, %v372_v11  ;;  %v400_v16 = vadd.f32 %v399_v12, %v398_v8 }
 0x172   : > { %v383_v17 = vmul.f32 0.03125, %v381_v13  ;;  %v409_v18 = vadd.f32 %v408_v14, %v407_v10 }
 0x173   : > { %v410_v19 = vmul.f32 0.03125, %v400_v16  ;;  %v412_v20 = vmul.f32 %v382_v15, %v382_v15 }
 0x174   : > { %v411_v21 = vmul.f32 0.03125, %v409_v18  ;;  %v413_v22 = vmul.f32 %v383_v17, %v383_v17 }
 0x175   : > { %v414_v23 = vsub.f32 %v410_v19, %v412_v20 }
 0x176   : > { %v415_v25 = vsub.f32 %v411_v21, %v413_v22 }
 0x177   : > { %v416_v26 = vmax.f32 %v414_v23, 0.0 }
 0x178   : > { %v417_v27 = vmax.f32 %v415_v25, 0.0 }
 0x179   : > { %v421_v28 = vadd.f32 1e-05, %v416_v26 }
 0x17a   : > { %v422_v36 = vadd.f32 1e-05, %v417_v27 }
 0x17b   : > { %753 = vrsqrt.f32 %v421_v28 }
 0x17c   : > { %755 = vrsqrt.f32 %v422_v36 }
 0x185   : > { %v754_v46 = vpop.eup %753 }
 0x186   : > { %v756_v48 = vpop.eup %755  ;;  %v436_v49 = vmul.f32 %v754_v46, %v429_v44 }
 0x187   : > { %v437_v50 = vmul.f32 %v756_v48, %v433_v45 }
 0x188   : > { %v438_v51 = vmul.f32 %v436_v49, %v382_v15  ;;  %v462_v52 = vrot.slane %v436_v49, %v428_v37 }
 0x189   : > { %v439_v53 = vmul.f32 %v437_v50, %v383_v17  ;;  %v466_v55 = vrot.slane %v437_v50, %v428_v37 }
 0x18a   : > { %v467_v56 = vmul.f32 %v462_v52, %v1164_v29  ;;  %v469_v57 = vmul.f32 %v462_v52, %v1172_v33  ;;  %v471_v58 = vmul.f32 %v462_v52, %v1166_v30  ;;  %v473_v59 = vmul.f32 %v462_v52, %v1174_v34 }
 0x18b   : > { %v442_v60 = vcombine.low %v438_v51, %v439_v53  ;;  %v468_v61 = vmul.f32 %v466_v55, %v1168_v31  ;;  %v470_v62 = vmul.f32 %v466_v55, %v1182_v38  ;;  %v472_v63 = vmul.f32 %v466_v55, %v1170_v32 }
 0x18c   : > { %v474_v0 = vmul.f32 %v466_v55, %v1184_v39 }
 0x18d   : > { %v449_v1 = vrot.slane %v442_v60, %v448_v54 }
 0x18f   : > { %v456_v29 = vrot.slane %v449_v1, %v448_v54 }
 0x191   : > { %v458_v3 = vsub.f32 %v648_v2, %v456_v29 }
 0x193   : > { %v479_v33 = vrot.slane %v458_v3, %v428_v37  ;;  %v483_v4 = vrot.slane %v458_v3, %v432_v41 }
 0x195   : > { %v486_v30 = vadd.f32 %v479_v33, %v467_v56  ;;  %v487_v34 = vadd.f32 %v483_v4, %v468_v61  ;;  %v488_v5 = vadd.f32 %v479_v33, %v469_v57  ;;  %v489_v31 = vadd.f32 %v483_v4, %v470_v62 }
 0x196   : > { %v490_v6 = vadd.f32 %v479_v33, %v471_v58  ;;  %v491_v38 = vadd.f32 %v483_v4, %v472_v63  ;;  %v492_v7 = vadd.f32 %v479_v33, %v473_v59  ;;  %v493_v32 = vadd.f32 %v483_v4, %v474_v0 }
 0x197   : > { %v494_v39 = vmax.f32 %v486_v30, 0.0  ;;  %v495_v8 = vmax.f32 %v487_v34, 0.0  ;;  %v496_v9 = vmax.f32 %v488_v5, 0.0  ;;  %v497_v10 = vmax.f32 %v489_v31, 0.0 }
 0x198   : > { %v498_v11 = vmax.f32 %v490_v6, 0.0  ;;  %v499_v12 = vmax.f32 %v491_v38, 0.0  ;;  %v500_v13 = vmax.f32 %v492_v7, 0.0  ;;  %v501_v14 = vmax.f32 %v493_v32, 0.0 }
 0x199   : > { %502 = vst [vmem:[%s238_s17] sm:$0xff] %v494_v39  ;;  %503 = vst [vmem:[%s238_s17 + $0x8] sm:$0xff] %v495_v8 }
 0x19a   : > { %504 = vst [vmem:[%s238_s17 + $0x10] sm:$0xff] %v496_v9  ;;  %505 = vst [vmem:[%s238_s17 + $0x18] sm:$0xff] %v497_v10 }
 0x19b   : > { %506 = vst [vmem:[%s238_s17 + $0x20] sm:$0xff] %v498_v11  ;;  %507 = vst [vmem:[%s238_s17 + $0x28] sm:$0xff] %v499_v12 }
 0x19c   : > { %508 = vst [vmem:[%s238_s17 + $0x30] sm:$0xff] %v500_v13  ;;  %509 = vst [vmem:[%s238_s17 + $0x38] sm:$0xff] %v501_v14 }
 0x19d   : > { %858 = shalt.err (!%p855_p7)
}
 0x19e   : > { %s859_s22 = scalar_lea.hbm %s1220_s25, 1024  ;;  %s863_s27 = scalar_lea.hbm %s1267_s3, 2048 }
 0x19f   : > { %p860_p9 = scmp.ne.s32.totalorder %s1220_s25, %s859_s22  ;;  %p864_p3 = scmp.lt.u32.totalorder %s1220_s25, %s1267_s3 }
 0x1a0   : > { %p865_p1 = scmp.lt.u32.totalorder %s863_s27, %s859_s22  ;;  %p867_p2 = scmp.lt.u32.totalorder %s859_s22, %s1220_s25 }
 0x1a1   : > { %p861_p12 = pnand %p860_p9, %p1288_p4 }
 0x1a2   : > { %p866_p10 = por %p865_p1, %p864_p3 }
 0x1a3   : > { %p862_p6 = pneg %p861_p12 }
 0x1a4   : > { %p868_p0 = por %p867_p2, %p866_p10 }
 0x1a6   : > { %p869_p11 = pnand %p868_p0, %p862_p6 }
 0x1a8   : > { %872 = shalt.err (!%p869_p11)
}
 0x1a9   : > { %s928_s5 = smov 256   ;;  %s929_s17 = smov 512  }
 0x1aa   : > { %s930_s6 = smov 16  }
 0x1ab   : > { %689 = dma.vmem_to_hbm [thread:$0]  (%p1288_p4), %s1215_s20, 1024, %s1220_s25, %s511_s23, %s928_s5, %s929_s17, %s930_s6  }
 0x1ac PF: > { %s539_s10 = sand.u32 1, %s903_s12   ;;  %p1289_p13 = scmp.ne.s32.totalorder %s1278_s28, 0 }
 0x1ad   : > { %p1290_p8 = scmp.ge.s32.totalorder %s915_s15, 2  ;;  %s540_s11 = scalar_lea.sflag [#allocation4], %s539_s10 }
 0x1af   : > { %p703_p5 = pnand %p1290_p8, %p1289_p13 }
 0x1b1   : > { %898 = dma.done.wait (!%p703_p5), %s540_s11, 1024  }
 0x1b2   : > { %900 = vsyncadd (!%p703_p5), %s540_s11, 4294966272  ;;  %p17_p7 = scmp.ge.s32.totalorder %s972_s16, 4   ;;  %s1291_s12 = smov %s907_s13 }
 0x1b3   : > { %s1292_s13 = smov %s911_s14  ;;  %s1293_s14 = smov %s983_s19 }
 0x1b4   : > { %s1294_s15 = smov %s972_s16  ;;  %19 = sbr.rel (!%p17_p7) target bundleno = 6 (0x6), region = 94 }
 0x1bb   :  { %545 = vsyncpa [#allocation3], 1 }
 0x1bc   :  { %547 = vsyncpa [#allocation3 + $0x1], 1 }
 0x1bd   :  { %548 = vsyncpa [#allocation6], 1 }
 0x1be   :  { %550 = vsyncpa [#allocation6 + $0x1], 1 }
 0x1bf   :  { %551 = vsyncpa [#allocation4], 1 }
 0x1c0   :  { %553 = vsyncpa [#allocation4 + $0x1], 1 }

</bundles_post_ra>
